<compile_context>
chip_gen: v7x
topology: tpu7x:2x2x1
jax: 0.10.0
libtpu: 0.0.40
codegen_flags: <defaults>
</compile_context>

<pallas_src>
import jax
import jax.numpy as jnp
import numpy as np
from jax.experimental import pallas as pl
from jax.experimental.pallas import tpu as pltpu

# Small, module-consistent shapes: C divisible by scale(4) and shift_div(8).
B, C, T, F = 2, 32, 8, 16
SCALE = 4
SHIFT_DIV = 8
WIDTH = C // SCALE           # 8 channels per Res2Net split
FOLD = C // SHIFT_DIV        # 4 channels shifted each temporal direction
LANES = WIDTH * F            # 128 -> one full TPU lane dimension per split
BN_EPS = 1e-5

assert LANES == 128, "repack assumes WIDTH*F == 128 lanes"
assert 2 * FOLD <= WIDTH, "all temporally shifted channels must live in split 0"


def res2tsm_head_kernel(x_ref, taps_ref, bn_scale_ref, bn_bias_ref,
                        fcw_ref, fcb_ref, out_ref):
    """x_ref: (B, SCALE, T, LANES) lane-dense repack of the (B, C, T, F) features."""
    x = x_ref[...]                       # (B, SCALE, T, LANES), 8 f32 vregs total
    taps = taps_ref[...]                 # (SCALE-1, 3, LANES) depthwise conv taps
    bn_scale = bn_scale_ref[...]         # (SCALE, LANES) folded BN scale
    bn_bias = bn_bias_ref[...]           # (SCALE, LANES) folded BN bias
    fcw = fcw_ref[...]                   # (SCALE, LANES) fc weight * 1/(T*F)

    # Masks for zero-padded temporal shifts (wrap-around rows must become 0).
    t_iota = jax.lax.broadcasted_iota(jnp.int32, (T, LANES), 0)
    lane_iota = jax.lax.broadcasted_iota(jnp.int32, (T, LANES), 1)
    not_first = t_iota > 0
    not_last = t_iota < T - 1

    def shift_fwd(v):    # out[t] = v[t+1], zero at t == T-1   (XLU roll + VPU select)
        return jnp.where(not_last, pltpu.roll(v, T - 1, 1), 0.0)

    def shift_bwd(v):    # out[t] = v[t-1], zero at t == 0
        return jnp.where(not_first, pltpu.roll(v, 1, 1), 0.0)

    # --- TemporalShift: all +-1 shifted channels live inside split 0 ----------
    x0 = x[:, 0]                                       # (B, T, LANES)
    y = jnp.where(lane_iota < FOLD * F, shift_fwd(x0),
                  jnp.where(lane_iota < 2 * FOLD * F, shift_bwd(x0), x0))

    # Fused BN(eval) + ReLU + global-avg-pool + Linear contribution of split i.
    def bn_relu_fc(i, v):
        return jnp.maximum(v * bn_scale[i:i + 1] + bn_bias[i:i + 1], 0.0) * fcw[i:i + 1]

    acc = bn_relu_fc(0, y)
    # --- Res2Net hierarchy: sp_i = split_i + y_{i-1}; y_i = depthwise conv ----
    for i in range(1, SCALE):
        sp = x[:, i] + y
        w = taps[i - 1]                                # (3, LANES)
        # (3,1) depthwise cross-correlation along T: w0*sp[t-1]+w1*sp[t]+w2*sp[t+1]
        y = w[0:1] * shift_bwd(sp) + w[1:2] * sp + w[2:3] * shift_fwd(sp)
        acc = acc + bn_relu_fc(i, y)

    # --- reduce to per-batch logit, sigmoid (VPU/EUP; MXU deliberately unused)
    part = jnp.sum(acc, axis=2, keepdims=True)         # (B, T, 1) lane reduce
    logit = jnp.sum(part, axis=1) + fcb_ref[...]       # (B, 1)
    out_ref[...] = 1.0 / (1.0 + jnp.exp(-logit))       # sigmoid


def _full_spec(shape):
    n = len(shape)
    return pl.BlockSpec(shape, lambda i, _n=n: (0,) * _n)


def mobilenetv4_res2tsm_head(feat, conv_w, gamma, beta, mean, var, fc_w, fc_b):
    """feat: (B, C, T, F); conv_w: (SCALE-1, WIDTH, 3) per-channel temporal taps;
    gamma/beta/mean/var: (C,); fc_w: (1, C); fc_b: (1,)."""
    # Lane-dense repack: split s, local channel c, freq f -> lane c*F + f.
    x = feat.reshape(B, SCALE, WIDTH, T, F).transpose(0, 1, 3, 2, 4)
    x = x.reshape(B, SCALE, T, LANES)

    def lanes_per_split(p):                      # (SCALE, WIDTH) -> (SCALE, LANES)
        return jnp.repeat(p, F, axis=-1)

    # Per-channel conv taps broadcast over F -> per-lane tap vectors.
    taps = jnp.repeat(jnp.transpose(conv_w, (0, 2, 1)), F, axis=-1)   # (SCALE-1,3,LANES)
    # Fold eval-mode BatchNorm into scale/bias (done once in the wrapper).
    bn_scale = gamma * jax.lax.rsqrt(var + BN_EPS)
    bn_bias = beta - mean * bn_scale
    bn_scale_v = lanes_per_split(bn_scale.reshape(SCALE, WIDTH))
    bn_bias_v = lanes_per_split(bn_bias.reshape(SCALE, WIDTH))
    # Dropout is identity in eval; fold the 1/(T*F) pooling factor into fc_w.
    fcw_v = lanes_per_split((fc_w[0] * (1.0 / (T * F))).reshape(SCALE, WIDTH))
    fcb_v = fc_b.reshape(1, 1)

    out = pl.pallas_call(
        res2tsm_head_kernel,
        out_shape=jax.ShapeDtypeStruct((B, 1), jnp.float32),
        grid=(1,),
        in_specs=[_full_spec(x.shape), _full_spec(taps.shape),
                  _full_spec(bn_scale_v.shape), _full_spec(bn_bias_v.shape),
                  _full_spec(fcw_v.shape), _full_spec(fcb_v.shape)],
        out_specs=_full_spec((B, 1)),
    )(x, taps, bn_scale_v, bn_bias_v, fcw_v, fcb_v)
    return out[:, 0]   # .squeeze(1)


def reference(x, conv_w, gamma, beta, mean, var, fc_w, fc_b):
    """Pure-JAX mirror of the PyTorch forward (eval mode) for validation."""
    t = jnp.transpose(x, (0, 2, 1, 3))                  # (B, T, C, F)
    o = jnp.zeros_like(t)
    o = o.at[:, :-1, :FOLD, :].set(t[:, 1:, :FOLD, :])
    o = o.at[:, 1:, FOLD:2 * FOLD, :].set(t[:, :-1, FOLD:2 * FOLD, :])
    o = o.at[:, :, 2 * FOLD:, :].set(t[:, :, 2 * FOLD:, :])
    xs = jnp.transpose(o, (0, 2, 1, 3))                 # (B, C, T, F)

    y = xs[:, :WIDTH]
    outs = [y]
    for i in range(1, SCALE):
        sp = xs[:, i * WIDTH:(i + 1) * WIDTH] + y
        w = conv_w[i - 1]                               # (WIDTH, 3)
        sp_p = jnp.pad(sp, ((0, 0), (0, 0), (1, 1), (0, 0)))
        y = (w[:, 0][None, :, None, None] * sp_p[:, :, :-2, :]
             + w[:, 1][None, :, None, None] * sp_p[:, :, 1:-1, :]
             + w[:, 2][None, :, None, None] * sp_p[:, :, 2:, :])
        outs.append(y)
    out = jnp.concatenate(outs, axis=1)
    out = (gamma[None, :, None, None] * (out - mean[None, :, None, None])
           / jnp.sqrt(var[None, :, None, None] + BN_EPS) + beta[None, :, None, None])
    out = jnp.maximum(out, 0.0)
    pooled = out.mean(axis=(2, 3))                      # (B, C)
    logits = pooled @ fc_w.T + fc_b                     # (B, 1)
    return jax.nn.sigmoid(logits)[:, 0]


if __name__ == "__main__":
    key = jax.random.PRNGKey(0)
    ks = jax.random.split(key, 8)

    # Deterministic synthetic parameters (shapes follow the module's __init__).
    x = jax.random.normal(ks[0], (B, C, T, F), jnp.float32)
    # Conv2d(width, width, (3,1), groups=width, bias=False) -> 3 taps per channel.
    conv_w = 0.2 * jax.random.normal(ks[1], (SCALE - 1, WIDTH, 3), jnp.float32)
    gamma = 1.0 + 0.1 * jax.random.normal(ks[2], (C,), jnp.float32)
    beta = 0.1 * jax.random.normal(ks[3], (C,), jnp.float32)
    mean = 0.1 * jax.random.normal(ks[4], (C,), jnp.float32)
    var = jax.random.uniform(ks[5], (C,), jnp.float32, 0.5, 1.5)
    fc_w = (1.0 / np.sqrt(C)) * jax.random.normal(ks[6], (1, C), jnp.float32)
    fc_b = 0.01 * jax.random.normal(ks[7], (1,), jnp.float32)

    out = jax.block_until_ready(
        mobilenetv4_res2tsm_head(x, conv_w, gamma, beta, mean, var, fc_w, fc_b))
    ref = jax.block_until_ready(
        reference(x, conv_w, gamma, beta, mean, var, fc_w, fc_b))
    err = float(jnp.max(jnp.abs(out - ref)))
    assert out.shape == (B,), out.shape
    assert err < 1e-4, f"mismatch vs reference: {err}"
    print("KERNEL_OK")
</pallas_src>

<mosaic_0001>
module attributes {stable_mosaic.version = 11 : i64} {
  func.func @res2tsm_head_kernel(%arg0: i32, %arg1: memref<2x4x8x128xf32, #tpu.memory_space<vmem>>, %arg2: memref<3x3x128xf32, #tpu.memory_space<vmem>>, %arg3: memref<4x128xf32, #tpu.memory_space<vmem>>, %arg4: memref<4x128xf32, #tpu.memory_space<vmem>>, %arg5: memref<4x128xf32, #tpu.memory_space<vmem>>, %arg6: memref<1x1xf32, #tpu.memory_space<vmem>>, %arg7: memref<2x1xf32, #tpu.memory_space<vmem>>) attributes {dimension_semantics = [#tpu.dimension_semantics<arbitrary>], iteration_bounds = array<i64: 1>, scalar_prefetch = 0 : i64, scratch_operands = 0 : i64, tpu.core_type = #tpu.core_type<tc>, window_params = [{pipeline_mode = #tpu.pipeline_mode<synchronous>, transform_indices = @transform_0, window_bounds = array<i64: 2, 4, 8, 128>}, {pipeline_mode = #tpu.pipeline_mode<synchronous>, transform_indices = @transform_1, window_bounds = array<i64: 3, 3, 128>}, {pipeline_mode = #tpu.pipeline_mode<synchronous>, transform_indices = @transform_2, window_bounds = array<i64: 4, 128>}, {pipeline_mode = #tpu.pipeline_mode<synchronous>, transform_indices = @transform_3, window_bounds = array<i64: 4, 128>}, {pipeline_mode = #tpu.pipeline_mode<synchronous>, transform_indices = @transform_4, window_bounds = array<i64: 4, 128>}, {pipeline_mode = #tpu.pipeline_mode<synchronous>, transform_indices = @transform_5, window_bounds = array<i64: 1, 1>}, {pipeline_mode = #tpu.pipeline_mode<synchronous>, transform_indices = @transform_6, window_bounds = array<i64: 2, 1>}]} {
    %c0 = arith.constant 0 : index
    %c0_0 = arith.constant 0 : index
    %c0_1 = arith.constant 0 : index
    %c0_2 = arith.constant 0 : index
    %0 = vector.load %arg1[%c0, %c0_0, %c0_1, %c0_2] : memref<2x4x8x128xf32, #tpu.memory_space<vmem>>, vector<2x4x8x128xf32>
    %c0_3 = arith.constant 0 : index
    %c0_4 = arith.constant 0 : index
    %c0_5 = arith.constant 0 : index
    %1 = vector.load %arg2[%c0_3, %c0_4, %c0_5] : memref<3x3x128xf32, #tpu.memory_space<vmem>>, vector<3x3x128xf32>
    %c0_6 = arith.constant 0 : index
    %c0_7 = arith.constant 0 : index
    %2 = vector.load %arg3[%c0_6, %c0_7] : memref<4x128xf32, #tpu.memory_space<vmem>>, vector<4x128xf32>
    %c0_8 = arith.constant 0 : index
    %c0_9 = arith.constant 0 : index
    %3 = vector.load %arg4[%c0_8, %c0_9] : memref<4x128xf32, #tpu.memory_space<vmem>>, vector<4x128xf32>
    %c0_10 = arith.constant 0 : index
    %c0_11 = arith.constant 0 : index
    %4 = vector.load %arg5[%c0_10, %c0_11] : memref<4x128xf32, #tpu.memory_space<vmem>>, vector<4x128xf32>
    %5 = tpu.iota {dimensions = array<i32: 0>} : vector<8x128xi32>
    %6 = tpu.iota {dimensions = array<i32: 1>} : vector<8x128xi32>
    %c0_i32 = arith.constant 0 : i32
    %7 = vector.broadcast %c0_i32 : i32 to vector<8x128xi32>
    %8 = arith.cmpi sgt, %5, %7 : vector<8x128xi32>
    %c7_i32 = arith.constant 7 : i32
    %9 = vector.broadcast %c7_i32 : i32 to vector<8x128xi32>
    %10 = arith.cmpi slt, %5, %9 : vector<8x128xi32>
    %11 = vector.extract_strided_slice %0 {offsets = [0, 0, 0, 0], sizes = [2, 1, 8, 128], strides = [1, 1, 1, 1]} : vector<2x4x8x128xf32> to vector<2x1x8x128xf32>
    %12 = vector.shape_cast %11 : vector<2x1x8x128xf32> to vector<2x8x128xf32>
    %c64_i32 = arith.constant 64 : i32
    %13 = vector.broadcast %c64_i32 : i32 to vector<8x128xi32>
    %14 = arith.cmpi slt, %6, %13 : vector<8x128xi32>
    %c7_i32_12 = arith.constant 7 : i32
    %15 = tpu.dynamic_rotate %12 by %c7_i32_12 dim 1 : vector<2x8x128xf32>, i32 -> vector<2x8x128xf32>
    %cst = arith.constant 0.000000e+00 : f32
    %16 = vector.shape_cast %10 : vector<8x128xi1> to vector<1x8x128xi1>
    %17 = vector.broadcast %16 : vector<1x8x128xi1> to vector<2x8x128xi1>
    %18 = vector.broadcast %cst : f32 to vector<2x8x128xf32>
    %19 = arith.select %17, %15, %18 : vector<2x8x128xi1>, vector<2x8x128xf32>
    %c128_i32 = arith.constant 128 : i32
    %20 = vector.broadcast %c128_i32 : i32 to vector<8x128xi32>
    %21 = arith.cmpi slt, %6, %20 : vector<8x128xi32>
    %c1_i32 = arith.constant 1 : i32
    %22 = tpu.dynamic_rotate %12 by %c1_i32 dim 1 : vector<2x8x128xf32>, i32 -> vector<2x8x128xf32>
    %cst_13 = arith.constant 0.000000e+00 : f32
    %23 = vector.shape_cast %8 : vector<8x128xi1> to vector<1x8x128xi1>
    %24 = vector.broadcast %23 : vector<1x8x128xi1> to vector<2x8x128xi1>
    %25 = vector.broadcast %cst_13 : f32 to vector<2x8x128xf32>
    %26 = arith.select %24, %22, %25 : vector<2x8x128xi1>, vector<2x8x128xf32>
    %27 = vector.shape_cast %21 : vector<8x128xi1> to vector<1x8x128xi1>
    %28 = vector.broadcast %27 : vector<1x8x128xi1> to vector<2x8x128xi1>
    %29 = arith.select %28, %26, %12 : vector<2x8x128xi1>, vector<2x8x128xf32>
    %30 = vector.shape_cast %14 : vector<8x128xi1> to vector<1x8x128xi1>
    %31 = vector.broadcast %30 : vector<1x8x128xi1> to vector<2x8x128xi1>
    %32 = arith.select %31, %19, %29 : vector<2x8x128xi1>, vector<2x8x128xf32>
    %33 = vector.extract_strided_slice %2 {offsets = [0, 0], sizes = [1, 128], strides = [1, 1]} : vector<4x128xf32> to vector<1x128xf32>
    %34 = vector.shape_cast %33 : vector<1x128xf32> to vector<1x1x128xf32>
    %35 = vector.broadcast %34 : vector<1x1x128xf32> to vector<2x8x128xf32>
    %36 = arith.mulf %32, %35 : vector<2x8x128xf32>
    %37 = vector.extract_strided_slice %3 {offsets = [0, 0], sizes = [1, 128], strides = [1, 1]} : vector<4x128xf32> to vector<1x128xf32>
    %38 = vector.shape_cast %37 : vector<1x128xf32> to vector<1x1x128xf32>
    %39 = vector.broadcast %38 : vector<1x1x128xf32> to vector<2x8x128xf32>
    %40 = arith.addf %36, %39 : vector<2x8x128xf32>
    %cst_14 = arith.constant 0.000000e+00 : f32
    %41 = vector.broadcast %cst_14 : f32 to vector<2x8x128xf32>
    %42 = arith.maximumf %40, %41 : vector<2x8x128xf32>
    %43 = vector.extract_strided_slice %4 {offsets = [0, 0], sizes = [1, 128], strides = [1, 1]} : vector<4x128xf32> to vector<1x128xf32>
    %44 = vector.shape_cast %43 : vector<1x128xf32> to vector<1x1x128xf32>
    %45 = vector.broadcast %44 : vector<1x1x128xf32> to vector<2x8x128xf32>
    %46 = arith.mulf %42, %45 : vector<2x8x128xf32>
    %47 = vector.extract_strided_slice %0 {offsets = [0, 1, 0, 0], sizes = [2, 1, 8, 128], strides = [1, 1, 1, 1]} : vector<2x4x8x128xf32> to vector<2x1x8x128xf32>
    %48 = vector.shape_cast %47 : vector<2x1x8x128xf32> to vector<2x8x128xf32>
    %49 = arith.addf %48, %32 : vector<2x8x128xf32>
    %50 = vector.extract_strided_slice %1 {offsets = [0, 0, 0], sizes = [1, 3, 128], strides = [1, 1, 1]} : vector<3x3x128xf32> to vector<1x3x128xf32>
    %51 = vector.shape_cast %50 : vector<1x3x128xf32> to vector<3x128xf32>
    %52 = vector.extract_strided_slice %51 {offsets = [0, 0], sizes = [1, 128], strides = [1, 1]} : vector<3x128xf32> to vector<1x128xf32>
    %c1_i32_15 = arith.constant 1 : i32
    %53 = tpu.dynamic_rotate %49 by %c1_i32_15 dim 1 : vector<2x8x128xf32>, i32 -> vector<2x8x128xf32>
    %cst_16 = arith.constant 0.000000e+00 : f32
    %54 = vector.shape_cast %8 : vector<8x128xi1> to vector<1x8x128xi1>
    %55 = vector.broadcast %54 : vector<1x8x128xi1> to vector<2x8x128xi1>
    %56 = vector.broadcast %cst_16 : f32 to vector<2x8x128xf32>
    %57 = arith.select %55, %53, %56 : vector<2x8x128xi1>, vector<2x8x128xf32>
    %58 = vector.shape_cast %52 : vector<1x128xf32> to vector<1x1x128xf32>
    %59 = vector.broadcast %58 : vector<1x1x128xf32> to vector<2x8x128xf32>
    %60 = arith.mulf %59, %57 : vector<2x8x128xf32>
    %61 = vector.extract_strided_slice %51 {offsets = [1, 0], sizes = [1, 128], strides = [1, 1]} : vector<3x128xf32> to vector<1x128xf32>
    %62 = vector.shape_cast %61 : vector<1x128xf32> to vector<1x1x128xf32>
    %63 = vector.broadcast %62 : vector<1x1x128xf32> to vector<2x8x128xf32>
    %64 = arith.mulf %63, %49 : vector<2x8x128xf32>
    %65 = arith.addf %60, %64 : vector<2x8x128xf32>
    %66 = vector.extract_strided_slice %51 {offsets = [2, 0], sizes = [1, 128], strides = [1, 1]} : vector<3x128xf32> to vector<1x128xf32>
    %c7_i32_17 = arith.constant 7 : i32
    %67 = tpu.dynamic_rotate %49 by %c7_i32_17 dim 1 : vector<2x8x128xf32>, i32 -> vector<2x8x128xf32>
    %cst_18 = arith.constant 0.000000e+00 : f32
    %68 = vector.shape_cast %10 : vector<8x128xi1> to vector<1x8x128xi1>
    %69 = vector.broadcast %68 : vector<1x8x128xi1> to vector<2x8x128xi1>
    %70 = vector.broadcast %cst_18 : f32 to vector<2x8x128xf32>
    %71 = arith.select %69, %67, %70 : vector<2x8x128xi1>, vector<2x8x128xf32>
    %72 = vector.shape_cast %66 : vector<1x128xf32> to vector<1x1x128xf32>
    %73 = vector.broadcast %72 : vector<1x1x128xf32> to vector<2x8x128xf32>
    %74 = arith.mulf %73, %71 : vector<2x8x128xf32>
    %75 = arith.addf %65, %74 : vector<2x8x128xf32>
    %76 = vector.extract_strided_slice %2 {offsets = [1, 0], sizes = [1, 128], strides = [1, 1]} : vector<4x128xf32> to vector<1x128xf32>
    %77 = vector.shape_cast %76 : vector<1x128xf32> to vector<1x1x128xf32>
    %78 = vector.broadcast %77 : vector<1x1x128xf32> to vector<2x8x128xf32>
    %79 = arith.mulf %75, %78 : vector<2x8x128xf32>
    %80 = vector.extract_strided_slice %3 {offsets = [1, 0], sizes = [1, 128], strides = [1, 1]} : vector<4x128xf32> to vector<1x128xf32>
    %81 = vector.shape_cast %80 : vector<1x128xf32> to vector<1x1x128xf32>
    %82 = vector.broadcast %81 : vector<1x1x128xf32> to vector<2x8x128xf32>
    %83 = arith.addf %79, %82 : vector<2x8x128xf32>
    %cst_19 = arith.constant 0.000000e+00 : f32
    %84 = vector.broadcast %cst_19 : f32 to vector<2x8x128xf32>
    %85 = arith.maximumf %83, %84 : vector<2x8x128xf32>
    %86 = vector.extract_strided_slice %4 {offsets = [1, 0], sizes = [1, 128], strides = [1, 1]} : vector<4x128xf32> to vector<1x128xf32>
    %87 = vector.shape_cast %86 : vector<1x128xf32> to vector<1x1x128xf32>
    %88 = vector.broadcast %87 : vector<1x1x128xf32> to vector<2x8x128xf32>
    %89 = arith.mulf %85, %88 : vector<2x8x128xf32>
    %90 = arith.addf %46, %89 : vector<2x8x128xf32>
    %91 = vector.extract_strided_slice %0 {offsets = [0, 2, 0, 0], sizes = [2, 1, 8, 128], strides = [1, 1, 1, 1]} : vector<2x4x8x128xf32> to vector<2x1x8x128xf32>
    %92 = vector.shape_cast %91 : vector<2x1x8x128xf32> to vector<2x8x128xf32>
    %93 = arith.addf %92, %75 : vector<2x8x128xf32>
    %94 = vector.extract_strided_slice %1 {offsets = [1, 0, 0], sizes = [1, 3, 128], strides = [1, 1, 1]} : vector<3x3x128xf32> to vector<1x3x128xf32>
    %95 = vector.shape_cast %94 : vector<1x3x128xf32> to vector<3x128xf32>
    %96 = vector.extract_strided_slice %95 {offsets = [0, 0], sizes = [1, 128], strides = [1, 1]} : vector<3x128xf32> to vector<1x128xf32>
    %c1_i32_20 = arith.constant 1 : i32
    %97 = tpu.dynamic_rotate %93 by %c1_i32_20 dim 1 : vector<2x8x128xf32>, i32 -> vector<2x8x128xf32>
    %cst_21 = arith.constant 0.000000e+00 : f32
    %98 = vector.shape_cast %8 : vector<8x128xi1> to vector<1x8x128xi1>
    %99 = vector.broadcast %98 : vector<1x8x128xi1> to vector<2x8x128xi1>
    %100 = vector.broadcast %cst_21 : f32 to vector<2x8x128xf32>
    %101 = arith.select %99, %97, %100 : vector<2x8x128xi1>, vector<2x8x128xf32>
    %102 = vector.shape_cast %96 : vector<1x128xf32> to vector<1x1x128xf32>
    %103 = vector.broadcast %102 : vector<1x1x128xf32> to vector<2x8x128xf32>
    %104 = arith.mulf %103, %101 : vector<2x8x128xf32>
    %105 = vector.extract_strided_slice %95 {offsets = [1, 0], sizes = [1, 128], strides = [1, 1]} : vector<3x128xf32> to vector<1x128xf32>
    %106 = vector.shape_cast %105 : vector<1x128xf32> to vector<1x1x128xf32>
    %107 = vector.broadcast %106 : vector<1x1x128xf32> to vector<2x8x128xf32>
    %108 = arith.mulf %107, %93 : vector<2x8x128xf32>
    %109 = arith.addf %104, %108 : vector<2x8x128xf32>
    %110 = vector.extract_strided_slice %95 {offsets = [2, 0], sizes = [1, 128], strides = [1, 1]} : vector<3x128xf32> to vector<1x128xf32>
    %c7_i32_22 = arith.constant 7 : i32
    %111 = tpu.dynamic_rotate %93 by %c7_i32_22 dim 1 : vector<2x8x128xf32>, i32 -> vector<2x8x128xf32>
    %cst_23 = arith.constant 0.000000e+00 : f32
    %112 = vector.shape_cast %10 : vector<8x128xi1> to vector<1x8x128xi1>
    %113 = vector.broadcast %112 : vector<1x8x128xi1> to vector<2x8x128xi1>
    %114 = vector.broadcast %cst_23 : f32 to vector<2x8x128xf32>
    %115 = arith.select %113, %111, %114 : vector<2x8x128xi1>, vector<2x8x128xf32>
    %116 = vector.shape_cast %110 : vector<1x128xf32> to vector<1x1x128xf32>
    %117 = vector.broadcast %116 : vector<1x1x128xf32> to vector<2x8x128xf32>
    %118 = arith.mulf %117, %115 : vector<2x8x128xf32>
    %119 = arith.addf %109, %118 : vector<2x8x128xf32>
    %120 = vector.extract_strided_slice %2 {offsets = [2, 0], sizes = [1, 128], strides = [1, 1]} : vector<4x128xf32> to vector<1x128xf32>
    %121 = vector.shape_cast %120 : vector<1x128xf32> to vector<1x1x128xf32>
    %122 = vector.broadcast %121 : vector<1x1x128xf32> to vector<2x8x128xf32>
    %123 = arith.mulf %119, %122 : vector<2x8x128xf32>
    %124 = vector.extract_strided_slice %3 {offsets = [2, 0], sizes = [1, 128], strides = [1, 1]} : vector<4x128xf32> to vector<1x128xf32>
    %125 = vector.shape_cast %124 : vector<1x128xf32> to vector<1x1x128xf32>
    %126 = vector.broadcast %125 : vector<1x1x128xf32> to vector<2x8x128xf32>
    %127 = arith.addf %123, %126 : vector<2x8x128xf32>
    %cst_24 = arith.constant 0.000000e+00 : f32
    %128 = vector.broadcast %cst_24 : f32 to vector<2x8x128xf32>
    %129 = arith.maximumf %127, %128 : vector<2x8x128xf32>
    %130 = vector.extract_strided_slice %4 {offsets = [2, 0], sizes = [1, 128], strides = [1, 1]} : vector<4x128xf32> to vector<1x128xf32>
    %131 = vector.shape_cast %130 : vector<1x128xf32> to vector<1x1x128xf32>
    %132 = vector.broadcast %131 : vector<1x1x128xf32> to vector<2x8x128xf32>
    %133 = arith.mulf %129, %132 : vector<2x8x128xf32>
    %134 = arith.addf %90, %133 : vector<2x8x128xf32>
    %135 = vector.extract_strided_slice %0 {offsets = [0, 3, 0, 0], sizes = [2, 1, 8, 128], strides = [1, 1, 1, 1]} : vector<2x4x8x128xf32> to vector<2x1x8x128xf32>
    %136 = vector.shape_cast %135 : vector<2x1x8x128xf32> to vector<2x8x128xf32>
    %137 = arith.addf %136, %119 : vector<2x8x128xf32>
    %138 = vector.extract_strided_slice %1 {offsets = [2, 0, 0], sizes = [1, 3, 128], strides = [1, 1, 1]} : vector<3x3x128xf32> to vector<1x3x128xf32>
    %139 = vector.shape_cast %138 : vector<1x3x128xf32> to vector<3x128xf32>
    %140 = vector.extract_strided_slice %139 {offsets = [0, 0], sizes = [1, 128], strides = [1, 1]} : vector<3x128xf32> to vector<1x128xf32>
    %c1_i32_25 = arith.constant 1 : i32
    %141 = tpu.dynamic_rotate %137 by %c1_i32_25 dim 1 : vector<2x8x128xf32>, i32 -> vector<2x8x128xf32>
    %cst_26 = arith.constant 0.000000e+00 : f32
    %142 = vector.shape_cast %8 : vector<8x128xi1> to vector<1x8x128xi1>
    %143 = vector.broadcast %142 : vector<1x8x128xi1> to vector<2x8x128xi1>
    %144 = vector.broadcast %cst_26 : f32 to vector<2x8x128xf32>
    %145 = arith.select %143, %141, %144 : vector<2x8x128xi1>, vector<2x8x128xf32>
    %146 = vector.shape_cast %140 : vector<1x128xf32> to vector<1x1x128xf32>
    %147 = vector.broadcast %146 : vector<1x1x128xf32> to vector<2x8x128xf32>
    %148 = arith.mulf %147, %145 : vector<2x8x128xf32>
    %149 = vector.extract_strided_slice %139 {offsets = [1, 0], sizes = [1, 128], strides = [1, 1]} : vector<3x128xf32> to vector<1x128xf32>
    %150 = vector.shape_cast %149 : vector<1x128xf32> to vector<1x1x128xf32>
    %151 = vector.broadcast %150 : vector<1x1x128xf32> to vector<2x8x128xf32>
    %152 = arith.mulf %151, %137 : vector<2x8x128xf32>
    %153 = arith.addf %148, %152 : vector<2x8x128xf32>
    %154 = vector.extract_strided_slice %139 {offsets = [2, 0], sizes = [1, 128], strides = [1, 1]} : vector<3x128xf32> to vector<1x128xf32>
    %c7_i32_27 = arith.constant 7 : i32
    %155 = tpu.dynamic_rotate %137 by %c7_i32_27 dim 1 : vector<2x8x128xf32>, i32 -> vector<2x8x128xf32>
    %cst_28 = arith.constant 0.000000e+00 : f32
    %156 = vector.shape_cast %10 : vector<8x128xi1> to vector<1x8x128xi1>
    %157 = vector.broadcast %156 : vector<1x8x128xi1> to vector<2x8x128xi1>
    %158 = vector.broadcast %cst_28 : f32 to vector<2x8x128xf32>
    %159 = arith.select %157, %155, %158 : vector<2x8x128xi1>, vector<2x8x128xf32>
    %160 = vector.shape_cast %154 : vector<1x128xf32> to vector<1x1x128xf32>
    %161 = vector.broadcast %160 : vector<1x1x128xf32> to vector<2x8x128xf32>
    %162 = arith.mulf %161, %159 : vector<2x8x128xf32>
    %163 = arith.addf %153, %162 : vector<2x8x128xf32>
    %164 = vector.extract_strided_slice %2 {offsets = [3, 0], sizes = [1, 128], strides = [1, 1]} : vector<4x128xf32> to vector<1x128xf32>
    %165 = vector.shape_cast %164 : vector<1x128xf32> to vector<1x1x128xf32>
    %166 = vector.broadcast %165 : vector<1x1x128xf32> to vector<2x8x128xf32>
    %167 = arith.mulf %163, %166 : vector<2x8x128xf32>
    %168 = vector.extract_strided_slice %3 {offsets = [3, 0], sizes = [1, 128], strides = [1, 1]} : vector<4x128xf32> to vector<1x128xf32>
    %169 = vector.shape_cast %168 : vector<1x128xf32> to vector<1x1x128xf32>
    %170 = vector.broadcast %169 : vector<1x1x128xf32> to vector<2x8x128xf32>
    %171 = arith.addf %167, %170 : vector<2x8x128xf32>
    %cst_29 = arith.constant 0.000000e+00 : f32
    %172 = vector.broadcast %cst_29 : f32 to vector<2x8x128xf32>
    %173 = arith.maximumf %171, %172 : vector<2x8x128xf32>
    %174 = vector.extract_strided_slice %4 {offsets = [3, 0], sizes = [1, 128], strides = [1, 1]} : vector<4x128xf32> to vector<1x128xf32>
    %175 = vector.shape_cast %174 : vector<1x128xf32> to vector<1x1x128xf32>
    %176 = vector.broadcast %175 : vector<1x1x128xf32> to vector<2x8x128xf32>
    %177 = arith.mulf %173, %176 : vector<2x8x128xf32>
    %178 = arith.addf %134, %177 : vector<2x8x128xf32>
    %cst_30 = arith.constant dense<0.000000e+00> : vector<2x8xf32>
    %179 = vector.multi_reduction <add>, %178, %cst_30 [2] : vector<2x8x128xf32> to vector<2x8xf32>
    %180 = vector.shape_cast %179 : vector<2x8xf32> to vector<2x8x1xf32>
    %cst_31 = arith.constant dense<0.000000e+00> : vector<2x1xf32>
    %181 = vector.multi_reduction <add>, %180, %cst_31 [1] : vector<2x8x1xf32> to vector<2x1xf32>
    %c0_32 = arith.constant 0 : index
    %c0_33 = arith.constant 0 : index
    %182 = vector.load %arg6[%c0_32, %c0_33] : memref<1x1xf32, #tpu.memory_space<vmem>>, vector<1x1xf32>
    %183 = vector.broadcast %182 : vector<1x1xf32> to vector<2x1xf32>
    %184 = arith.addf %181, %183 : vector<2x1xf32>
    %cst_34 = arith.constant 0.000000e+00 : f32
    %185 = vector.broadcast %cst_34 : f32 to vector<2x1xf32>
    %186 = arith.subf %185, %184 : vector<2x1xf32>
    %187 = math.exp %186 : vector<2x1xf32>
    %cst_35 = arith.constant 1.000000e+00 : f32
    %188 = vector.broadcast %cst_35 : f32 to vector<2x1xf32>
    %189 = arith.addf %188, %187 : vector<2x1xf32>
    %cst_36 = arith.constant 1.000000e+00 : f32
    %190 = vector.broadcast %cst_36 : f32 to vector<2x1xf32>
    %191 = arith.divf %190, %189 : vector<2x1xf32>
    %c0_37 = arith.constant 0 : index
    %c0_38 = arith.constant 0 : index
    %192 = vector.load %arg7[%c0_37, %c0_38] : memref<2x1xf32, #tpu.memory_space<vmem>>, vector<2x1xf32>
    tpu.vector_store %arg7[%c0_37, %c0_38], %191 {strides = array<i32>} : memref<2x1xf32, #tpu.memory_space<vmem>>, vector<2x1xf32>,
    return
  }
  func.func @transform_0(%arg0: i32) -> (i32, i32, i32, i32) {
    %c0_i32 = arith.constant 0 : i32
    %c0_i32_0 = arith.constant 0 : i32
    %c0_i32_1 = arith.constant 0 : i32
    %c0_i32_2 = arith.constant 0 : i32
    %c0_i32_3 = arith.constant 0 : i32
    return %c0_i32, %c0_i32_0, %c0_i32_1, %c0_i32_2 : i32, i32, i32, i32
  }
  func.func @transform_1(%arg0: i32) -> (i32, i32, i32) {
    %c0_i32 = arith.constant 0 : i32
    %c0_i32_0 = arith.constant 0 : i32
    %c0_i32_1 = arith.constant 0 : i32
    %c0_i32_2 = arith.constant 0 : i32
    return %c0_i32, %c0_i32_0, %c0_i32_1 : i32, i32, i32
  }
  func.func @transform_2(%arg0: i32) -> (i32, i32) {
    %c0_i32 = arith.constant 0 : i32
    %c0_i32_0 = arith.constant 0 : i32
    %c0_i32_1 = arith.constant 0 : i32
    return %c0_i32, %c0_i32_0 : i32, i32
  }
  func.func @transform_3(%arg0: i32) -> (i32, i32) {
    %c0_i32 = arith.constant 0 : i32
    %c0_i32_0 = arith.constant 0 : i32
    %c0_i32_1 = arith.constant 0 : i32
    return %c0_i32, %c0_i32_0 : i32, i32
  }
  func.func @transform_4(%arg0: i32) -> (i32, i32) {
    %c0_i32 = arith.constant 0 : i32
    %c0_i32_0 = arith.constant 0 : i32
    %c0_i32_1 = arith.constant 0 : i32
    return %c0_i32, %c0_i32_0 : i32, i32
  }
  func.func @transform_5(%arg0: i32) -> (i32, i32) {
    %c0_i32 = arith.constant 0 : i32
    %c0_i32_0 = arith.constant 0 : i32
    %c0_i32_1 = arith.constant 0 : i32
    return %c0_i32, %c0_i32_0 : i32, i32
  }
  func.func @transform_6(%arg0: i32) -> (i32, i32) {
    %c0_i32 = arith.constant 0 : i32
    %c0_i32_0 = arith.constant 0 : i32
    %c0_i32_1 = arith.constant 0 : i32
    return %c0_i32, %c0_i32_0 : i32, i32
  }
}

</mosaic_0001>

<bundles_post_ra>
// kernel: tpu_custom_call.1
= control target key start
LH: loop header
LB: loop body
LE: loop exit
PB: predicated region body
PF: predicated region fallthrough
CT: control target
= control target key end

     0   :  { %s555_s0 = inlined_call_operand.hbm [shape: f32[2,4,8,128], index: 0, kind: input, shape index: {}]   ;;  %s556_s1 = inlined_call_operand.hbm [shape: f32[3,3,128], index: 1, kind: input, shape index: {}]   ;;  %s557_s2 = inlined_call_operand.vmem [shape: f32[4,128], index: 2, kind: input, shape index: {}]   ;;  %s558_s3 = inlined_call_operand.vmem [shape: f32[4,128], index: 3, kind: input, shape index: {}]   ;;  %s559_s4 = inlined_call_operand.vmem [shape: f32[4,128], index: 4, kind: input, shape index: {}]   ;;  %s560_s5 = inlined_call_operand.<no memory space> [shape: f32[1,1], index: 5, kind: input, shape index: {}]   ;;  %s561_s6 = inlined_call_operand.vmem [shape: f32[2,1], index: 6, kind: output, shape index: {}]  }
   0x1   :  { %v11_v0 = vstv %s560_s5 }
   0x2   :  { %12 = vst [vmem:[#allocation2] sm:$0x1] %v11_v0 }
   0x3   :  { %13 = vsyncpa [#allocation4], 0 }
   0x4   :  { %14 = vsyncpa [#allocation6], 0  ;;  %s391_s23 = smov [#allocation3]   ;;  %s343_s27 = scalar_lea.hbm %s555_s0, 1024 }
   0x5   :  { %s20_s24 = sshll.u32 %s391_s23, 4  ;;  %p344_p0 = scmp.ne.s32.totalorder %s555_s0, %s343_s27  ;;  %s21_s24 = int_to_ptr.vmem [resolvable:$true] %s20_s24 }
   0x6   :  { %p347_p1 = scmp.lt.u32.totalorder %s343_s27, %s555_s0 }
   0x8   :  { %p349_p2 = pnand %p347_p1, %p344_p0 }
   0xa   :  { %352 = shalt.err (!%p349_p2)
}
   0xb   :  { %s353_s5 = scalar_lea.vmem %s21_s24, 1024  ;;  %p358_p4 = scmp.lt.s32.totalorder %s21_s24, %s21_s24 }
   0xc   :  { %p354_p3 = scmp.ne.s32.totalorder %s21_s24, %s353_s5  ;;  %p359_p5 = scmp.lt.s32.totalorder %s353_s5, %s353_s5 }
   0xe   :  { %p360_p6 = por %p359_p5, %p358_p4 }
  0x10   :  { %p361_p7 = pnand %p360_p6, %p354_p3 }
  0x12   :  { %364 = shalt.err (!%p361_p7)
}
  0x13   :  { %s392_s8 = smov 128   ;;  %s393_s9 = smov 8  }
  0x14   :  { %26 = dma.hbm_to_vmem [thread:$0]  %s555_s0, 1024, %s21_s24, [#allocation4], %s392_s8, %s392_s8, %s393_s9  }
  0x15   :  { %s394_s12 = smov [#allocation5]   ;;  %s365_s16 = scalar_lea.hbm %s556_s1, 192 }
  0x16   :  { %s32_s13 = sshll.u32 %s394_s12, 4  ;;  %p366_p8 = scmp.ne.s32.totalorder %s556_s1, %s365_s16  ;;  %s33_s13 = int_to_ptr.vmem [resolvable:$true] %s32_s13 }
  0x17   :  { %p369_p9 = scmp.lt.u32.totalorder %s365_s16, %s556_s1 }
  0x19   :  { %p371_p10 = pnand %p369_p9, %p366_p8 }
  0x1b   :  { %374 = shalt.err (!%p371_p10)
}
  0x1c   :  { %s375_s21 = scalar_lea.vmem %s33_s13, 192  ;;  %p380_p12 = scmp.lt.s32.totalorder %s33_s13, %s33_s13 }
  0x1d   :  { %p376_p11 = scmp.ne.s32.totalorder %s33_s13, %s375_s21  ;;  %p381_p13 = scmp.lt.s32.totalorder %s375_s21, %s375_s21 }
  0x1f   :  { %p382_p0 = por %p381_p13, %p380_p12 }
  0x21   :  { %p383_p1 = pnand %p382_p0, %p376_p11 }
  0x23   :  { %386 = shalt.err (!%p383_p1)
}
  0x24   :  { %s395_s0 = smov 64   ;;  %s396_s22 = smov 4  }
  0x25   :  { %38 = dma.hbm_to_vmem [thread:$0]  %s556_s1, 192, %s33_s13, [#allocation6], %s395_s0, %s395_s0, %s396_s22  }
  0x26   :  { %387 = dma.done.wait [#allocation4], 1024  }
  0x27   :  { %388 = vsyncadd [#allocation4], 4294966272 }
  0x28   :  { %389 = dma.done.wait [#allocation6], 192  }
  0x29   :  { %390 = vsyncadd [#allocation6], 4294967104  ;;  %v67_v1 = vlaneseq  ;;  %v57_v4 = vld [vmem:[#allocation3 + $0x20] sm:$0xff]  ;;  %v58_v10 = vld [vmem:[#allocation3 + $0x28] sm:$0xff]  ;;  %vm317_vm3 = vcmask 1041409   ;;  %vm320_vm4 = vcmask 1024  }
  0x2a   :  { %v75_v5 = vrot.slane %v57_v4, 1  ;;  %v61_v7 = vld [vmem:[#allocation5] sm:$0x7]  ;;  %v82_v9 = vrot.slane %v57_v4, 7  ;;  %v54_v28 = vld [vmem:[#allocation3 + $0x8] sm:$0xff]  ;;  %v59_v36 = vld [vmem:[#allocation3 + $0x30] sm:$0xff] }
  0x2b   :  { %v459_v2 = vshrl.u32 %v67_v1, 7  ;;  %v70_v3 = vand.u32 127, %v67_v1  ;;  %v53_v14 = vld [vmem:[#allocation3] sm:$0xff]  ;;  %v55_v62 = vld [vmem:[#allocation3 + $0x10] sm:$0xff] }
  0x2c   :  { %v74_v20 = vrot.slane %v53_v14, 1  ;;  %v81_v25 = vrot.slane %v53_v14, 7  ;;  %v62_v33 = vld [vmem:[#allocation5 + $0x4] sm:$0x7]  ;;  %v492_v37 = vld [vmem:[%s557_s2] sm:$0xf] }
  0x2d   :  { %vm72_vm0 = vcmp.lt.s32.totalorder %v459_v2, 7  ;;  %vm71_vm1 = vcmp.gt.s32.totalorder %v459_v2, 0  ;;  %v464_v6 = vsub.s32 1, %v459_v2  ;;  %vm73_vm2 = vcmp.lt.s32.totalorder %v70_v3, 64  ;;  %v498_v43 = vld [vmem:[%s558_s3] sm:$0xf] }
  0x2e   :  { %v79_v8 = vsel %vm72_vm0, %v75_v5, 0.0  ;;  %v469_v11 = vsub.s32 0, %v459_v2  ;;  %v472_v12 = vsub.s32 2, %v459_v2  ;;  %v86_v13 = vsel %vm71_vm1, %v82_v9, 0.0  ;;  %v521_v63 = vld [vmem:[%s559_s4] sm:$0xf] }
  0x2f   :  { %v94_v15 = vsel %vm73_vm2, %v79_v8, %v86_v13  ;;  %v130_v16 = vrot.slane %v61_v7, %v464_v6  ;;  %v78_v24 = vsel %vm72_vm0, %v74_v20, 0.0  ;;  %v85_v31 = vsel %vm71_vm1, %v81_v25, 0.0  ;;  %v63_v5 = vld [vmem:[#allocation5 + $0x8] sm:$0x7] }
  0x30   :  { %v116_v17 = vadd.f32 %v94_v15, %v58_v10  ;;  %v124_v18 = vrot.slane %v61_v7, %v469_v11  ;;  %v142_v19 = vrot.slane %v61_v7, %v472_v12  ;;  %v93_v32 = vsel %vm73_vm2, %v78_v24, %v85_v31  ;;  %v60_v10 = vld [vmem:[#allocation3 + $0x38] sm:$0xff] }
  0x31   :  { %v115_v35 = vadd.f32 %v93_v32, %v54_v28  ;;  %v184_v40 = vrot.slane %v62_v33, %v464_v6  ;;  %v98_v44 = vrot.slane %v492_v37, %v469_v11  ;;  %v178_v46 = vrot.slane %v62_v33, %v469_v11 }
  0x32   :  { %v118_v21 = vrot.slane %v116_v17, 7  ;;  %v136_v22 = vrot.slane %v116_v17, 1  ;;  %v132_v23 = vmul.f32 %v130_v16, %v116_v17  ;;  %v150_v48 = vrot.slane %v492_v37, %v464_v6 }
  0x33   :  { %v117_v39 = vrot.slane %v115_v35, 7  ;;  %v131_v41 = vmul.f32 %v130_v16, %v115_v35  ;;  %v135_v42 = vrot.slane %v115_v35, 1  ;;  %v196_v49 = vrot.slane %v62_v33, %v472_v12 }
  0x34   :  { %v120_v26 = vsel %vm71_vm1, %v118_v21, 0.0  ;;  %v138_v27 = vsel %vm72_vm0, %v136_v22, 0.0  ;;  %v104_v54 = vrot.slane %v498_v43, %v469_v11  ;;  %v100_v58 = vmul.f32 %v98_v44, %v94_v15 }
  0x35   :  { %v126_v29 = vmul.f32 %v124_v18, %v120_v26  ;;  %v144_v30 = vmul.f32 %v142_v19, %v138_v27  ;;  %v119_v47 = vsel %vm71_vm1, %v117_v39, 0.0  ;;  %v137_v51 = vsel %vm72_vm0, %v135_v42, 0.0 }
  0x36   :  { %v125_v50 = vmul.f32 %v124_v18, %v119_v47  ;;  %v143_v57 = vmul.f32 %v142_v19, %v137_v51  ;;  %v156_v59 = vrot.slane %v498_v43, %v464_v6  ;;  %v204_v8 = vrot.slane %v492_v37, %v472_v12 }
  0x37   :  { %v134_v34 = vadd.f32 %v132_v23, %v126_v29  ;;  %v106_v13 = vadd.f32 %v104_v54, %v100_v58  ;;  %v112_v14 = vrot.slane %v521_v63, %v469_v11  ;;  %v164_v15 = vrot.slane %v521_v63, %v464_v6 }
  0x38   :  { %v133_v56 = vadd.f32 %v131_v41, %v125_v50  ;;  %v257_v16 = vsub.s32 3, %v459_v2  ;;  %v210_v19 = vrot.slane %v498_v43, %v472_v12  ;;  %v232_v21 = vrot.slane %v63_v5, %v469_v11 }
  0x39   :  { %v146_v38 = vadd.f32 %v144_v30, %v134_v34  ;;  %v238_v22 = vrot.slane %v63_v5, %v464_v6  ;;  %v250_v27 = vrot.slane %v63_v5, %v472_v12  ;;  %v108_v29 = vmax.f32 %v106_v13, 0.0 }
  0x3a   :  { %v145_v4 = vadd.f32 %v143_v57, %v133_v56  ;;  %v99_v30 = vmul.f32 %v98_v44, %v93_v32  ;;  %v218_v41 = vrot.slane %v521_v63, %v472_v12  ;;  %v56_v44 = vld [vmem:[#allocation3 + $0x18] sm:$0xff]  ;;  %v264_v58 = vrot.slane %v498_v43, %v257_v16 }
  0x3b   :  { %v170_v45 = vadd.f32 %v146_v38, %v59_v36  ;;  %v152_v0 = vmul.f32 %v150_v48, %v146_v38  ;;  %v114_v51 = vmul.f32 %v112_v14, %v108_v29 }
  0x3c   :  { %v169_v9 = vadd.f32 %v145_v4, %v55_v62  ;;  %v151_v36 = vmul.f32 %v150_v48, %v145_v4  ;;  %v105_v47 = vadd.f32 %v104_v54, %v99_v30 }
  0x3d   :  { %v172_v52 = vrot.slane %v170_v45, 7  ;;  %v190_v53 = vrot.slane %v170_v45, 1  ;;  %v186_v55 = vmul.f32 %v184_v40, %v170_v45  ;;  %v158_v17 = vadd.f32 %v156_v59, %v152_v0 }
  0x3e   :  { %v171_v20 = vrot.slane %v169_v9, 7  ;;  %v185_v23 = vmul.f32 %v184_v40, %v169_v9  ;;  %v189_v24 = vrot.slane %v169_v9, 1  ;;  %v272_v9 = vrot.slane %v521_v63, %v257_v16 }
  0x3f   :  { %v174_v60 = vsel %vm71_vm1, %v172_v52, 0.0  ;;  %v192_v61 = vsel %vm72_vm0, %v190_v53, 0.0  ;;  %v160_v34 = vmax.f32 %v158_v17, 0.0  ;;  %v258_v52 = vrot.slane %v492_v37, %v257_v16 }
  0x40   :  { %v180_v1 = vmul.f32 %v178_v46, %v174_v60  ;;  %v198_v3 = vmul.f32 %v196_v49, %v192_v61  ;;  %v173_v28 = vsel %vm71_vm1, %v171_v20, 0.0  ;;  %v191_v33 = vsel %vm72_vm0, %v189_v24, 0.0 }
  0x41   :  { %v179_v31 = vmul.f32 %v178_v46, %v173_v28  ;;  %v197_v40 = vmul.f32 %v196_v49, %v191_v33  ;;  %v166_v48 = vmul.f32 %v164_v15, %v160_v34  ;;  %v157_v53 = vadd.f32 %v156_v59, %v151_v36 }
  0x42   :  { %v188_v7 = vadd.f32 %v186_v55, %v180_v1  ;;  %v107_v60 = vmax.f32 %v105_v47, 0.0 }
  0x43   :  { %v187_v39 = vadd.f32 %v185_v23, %v179_v31  ;;  %v159_v62 = vmax.f32 %v157_v53, 0.0  ;;  %v168_v54 = vadd.f32 %v166_v48, %v114_v51 }
  0x44   :  { %v200_v18 = vadd.f32 %v198_v3, %v188_v7 }
  0x45   :  { %v199_v50 = vadd.f32 %v197_v40, %v187_v39  ;;  %v165_v13 = vmul.f32 %v164_v15, %v159_v62 }
  0x46   :  { %v206_v25 = vmul.f32 %v204_v8, %v200_v18  ;;  %v224_v26 = vadd.f32 %v200_v18, %v60_v10  ;;  %v113_v10 = vmul.f32 %v112_v14, %v107_v60 }
  0x47   :  { %v205_v56 = vmul.f32 %v204_v8, %v199_v50  ;;  %v223_v12 = vadd.f32 %v199_v50, %v56_v44 }
  0x48   :  { %v226_v35 = vrot.slane %v224_v26, 7  ;;  %v244_v11 = vrot.slane %v224_v26, 1  ;;  %v212_v6 = vadd.f32 %v210_v19, %v206_v25  ;;  %v240_v38 = vmul.f32 %v238_v22, %v224_v26 }
  0x49   :  { %v225_v61 = vrot.slane %v223_v12, 7  ;;  %v211_v0 = vadd.f32 %v210_v19, %v205_v56  ;;  %v239_v1 = vmul.f32 %v238_v22, %v223_v12  ;;  %v243_v3 = vrot.slane %v223_v12, 1 }
  0x4a   :  { %v228_v42 = vsel %vm71_vm1, %v226_v35, 0.0  ;;  %v246_v32 = vsel %vm72_vm0, %v244_v11, 0.0  ;;  %v214_v49 = vmax.f32 %v212_v6, 0.0  ;;  %v167_v24 = vadd.f32 %v165_v13, %v113_v10  ;;  %v328_v11 = vld [vmem:[#allocation2] ss:$0 sm:$0xff] }
  0x4b   :  { %v234_v45 = vmul.f32 %v232_v21, %v228_v42  ;;  %v252_v46 = vmul.f32 %v250_v27, %v246_v32  ;;  %v227_v37 = vsel %vm71_vm1, %v225_v61, 0.0  ;;  %v245_v7 = vsel %vm72_vm0, %v243_v3, 0.0 }
  0x4c   :  { %v220_v4 = vmul.f32 %v218_v41, %v214_v49  ;;  %v233_v59 = vmul.f32 %v232_v21, %v227_v37  ;;  %v251_v43 = vmul.f32 %v250_v27, %v245_v7  ;;  %v213_v17 = vmax.f32 %v211_v0, 0.0 }
  0x4d   :  { %v242_v55 = vadd.f32 %v240_v38, %v234_v45 }
  0x4e   :  { %v241_v18 = vadd.f32 %v239_v1, %v233_v59  ;;  %v222_v19 = vadd.f32 %v220_v4, %v168_v54  ;;  %v219_v25 = vmul.f32 %v218_v41, %v213_v17 }
  0x4f   :  { %v254_v57 = vadd.f32 %v252_v46, %v242_v55 }
  0x50   :  { %v253_v22 = vadd.f32 %v251_v43, %v241_v18  ;;  %v221_v2 = vadd.f32 %v219_v25, %v167_v24 }
  0x51   :  { %v260_v5 = vmul.f32 %v258_v52, %v254_v57 }
  0x52   :  { %v259_v26 = vmul.f32 %v258_v52, %v253_v22 }
  0x53   :  { %v266_v8 = vadd.f32 %v264_v58, %v260_v5 }
  0x54   :  { %v265_v21 = vadd.f32 %v264_v58, %v259_v26 }
  0x55   :  { %v268_v20 = vmax.f32 %v266_v8, 0.0 }
  0x56   :  { %v267_v29 = vmax.f32 %v265_v21, 0.0 }
  0x57   :  { %v274_v23 = vmul.f32 %v272_v9, %v268_v20 }
  0x58   :  { %v273_v30 = vmul.f32 %v272_v9, %v267_v29 }
  0x59   :  { %v276_v28 = vadd.f32 %v274_v23, %v222_v19 }
  0x5a   :  { %v275_v31 = vadd.f32 %v273_v30, %v221_v2 }
  0x5b   :  { %279 = vadd.xlane.f32.xlu0 %v276_v28 }
  0x5f   :  { %277 = vadd.xlane.f32.xlu0 %v275_v31 }
  0xe8   :  { %v280_v63 = vpop.xlane.xlu0 %279 }
  0xe9   :  { %v287_v14 = vrot.slane %v280_v63, 4 }
  0xeb   :  { %v288_v15 = vadd.f32 %v287_v14, %v280_v63 }
  0xec   :  { %v278_v33 = vpop.xlane.xlu0 %277 }
  0xed   :  { %v289_v16 = vrot.slane %v288_v15, 2  ;;  %v281_v34 = vrot.slane %v278_v33, 4 }
  0xef   :  { %v290_v27 = vadd.f32 %v289_v16, %v288_v15  ;;  %v282_v36 = vadd.f32 %v281_v34, %v278_v33 }
  0xf1   :  { %v291_v35 = vrot.slane %v290_v27, 1  ;;  %v283_v38 = vrot.slane %v282_v36, 2 }
  0xf3   :  { %v292_v6 = vadd.f32 %v291_v35, %v290_v27  ;;  %v284_v40 = vadd.f32 %v283_v38, %v282_v36 }
  0xf5   :  { %v301_v39 = vadd.f32 %v328_v11, %v292_v6  ;;  %v285_v42 = vrot.slane %v284_v40, 1 }
  0xf7   :  { %v303_v41 = vsub.f32 0.0, %v301_v39  ;;  %v286_v44 = vadd.f32 %v285_v42, %v284_v40 }
  0xf9   :  { %v306_v32 = vmul.f32 1.442695, %v303_v41  ;;  %v300_v45 = vadd.f32 %v328_v11, %v286_v44 }
  0xfb   :  { %335 = vpow2.f32 %v306_v32  ;;  %v302_v46 = vsub.f32 0.0, %v300_v45 }
  0xfd   :  { %v304_v47 = vmul.f32 1.442695, %v302_v46 }
  0xff   :  { %337 = vpow2.f32 %v304_v47 }
 0x105   :  { %v336_v50 = vpop.eup %335 }
 0x106   :  { %v309_v51 = vadd.f32 1.0, %v336_v50 }
 0x108   :  { %339 = vrcp.f32 %v309_v51 }
 0x109   :  { %v338_v48 = vpop.eup %337 }
 0x10a   :  { %v308_v52 = vadd.f32 1.0, %v338_v48 }
 0x10c   :  { %341 = vrcp.f32 %v308_v52 }
 0x112   :  { %v340_v53 = vpop.eup %339 }
 0x113   :  { %v316_v49 = vrot.slane %v340_v53, 7 }
 0x116   :  { %v342_v55 = vpop.eup %341 }
 0x117   :  { %v318_v56 = vsel %vm317_vm3, %v316_v49, %v342_v55 }
 0x118   :  { %321 = vst.msk [vmem:[%s561_s6] sm:$0x3] %vm320_vm4, %v318_v56 }
 0x119   :  { %326 = vsyncpa [#allocation4], 1 }
 0x11a   :  { %327 = vsyncpa [#allocation6], 1 }

</bundles_post_ra>
